<compile_context>
chip_gen: v5e
topology: v5e:2x2
jax: 0.10.0
libtpu: 0.0.40
codegen_flags: <defaults>
</compile_context>

<pallas_src>
import numpy as np
import jax
import jax.numpy as jnp
from jax import lax
from jax.experimental import pallas as pl
from jax.experimental.pallas import tpu as pltpu


def _round_up(x, m):
    return ((x + m - 1) // m) * m


# ----------------------------------------------------------------------------
# Parameter / "buffer" construction (mirrors STFT.__init_kernel__, defaults:
# enframe_mode='continue', win_type='hamm', win_sqrt=False, pad_center=False).
# ----------------------------------------------------------------------------
def make_stft_params(win_len, win_hop, fft_len, num_frames):
    assert fft_len >= win_len
    N, hop = fft_len, win_hop
    dim = N // 2 + 1
    dim_pad = _round_up(dim, 128)

    n = np.arange(N)[:, None]
    k = np.arange(dim)[None, :]
    ang = 2.0 * np.pi * n * k / N
    cos_m = np.cos(ang)                                    # real part of rfft(eye(N))
    msin_m = -np.sin(ang)                                  # imag part
    fft_kernel = np.concatenate([cos_m, msin_m], axis=1)   # (N, 2*dim)
    ifft_kernel = np.linalg.pinv(fft_kernel)               # (2*dim, N)

    # scipy.signal.get_window('hamm', win_len) (periodic hamming)
    m = np.arange(win_len)
    window = 0.54 - 0.46 * np.cos(2.0 * np.pi * m / win_len)
    # enframe_mode == 'continue': pad window to fft_len
    left = (fft_len - win_len) // 2
    right = left + (fft_len - win_len) % 2
    window = np.pad(window, (left, right))
    padded_window = (window ** 2).astype(np.float32)       # win_sqrt=False path

    # Fused forward weight: spec = frames @ [window*cos | window*(-sin)], each
    # half lane-padded to a multiple of 128 so real/imag come straight out of
    # the MXU as aligned lane slices.
    Wri = np.zeros((N, 2 * dim_pad), np.float32)
    Wri[:, :dim] = window[:, None] * cos_m
    Wri[:, dim_pad:dim_pad + dim] = window[:, None] * msin_m

    # Fused inverse weight: seg = [re | im]_padded @ [Ir ; Ii] (pad rows zero).
    ifft_w = ifft_kernel * window[None, :]                 # (2*dim, N)
    Iri = np.zeros((2 * dim_pad, N), np.float32)
    Iri[:dim] = ifft_w[:dim]
    Iri[dim_pad:dim_pad + dim] = ifft_w[dim:]

    # Host-precomputed OLA of the squared window (coff) and its masked
    # reciprocal, sliced to [rm_start : rm_start + out_len], laid out as
    # (F, hop) chunks to match the in-kernel output tile.
    F = num_frames
    assert N == 2 * hop, "this build assumes win_hop == fft_len // 2 (module default)"
    L = (F + 1) * hop
    coff = np.zeros((L,), np.float64)
    for f in range(F):
        coff[f * hop: f * hop + N] += padded_window
    coff = coff[hop: hop + F * hop]
    norm = np.where(coff > 1e-7, 1.0 / np.maximum(coff, 1e-30), 1.0)
    norm = norm.astype(np.float32).reshape(F, hop)

    return Wri, Iri, norm, padded_window


# ----------------------------------------------------------------------------
# Pallas kernel: STFT -> iSTFT round trip for one (frame-tile, batch) step.
# ----------------------------------------------------------------------------
def _build_kernel(TF, TFp, hop, N, dim_pad):
    def kernel(frames_ref, wri_ref, iri_ref, norm_ref, out_ref):
        frames = frames_ref[0, 0]                                    # (TFp, N)

        # --- forward windowed rDFT: one fused MXU matmul -> [real | imag] ---
        spec = jnp.dot(frames, wri_ref[...],
                       preferred_element_type=jnp.float32)           # (TFp, 2*dim_pad)
        real = spec[:, :dim_pad]                                     # lane-aligned slice
        imag = spec[:, dim_pad:]

        # --- mag/phase round trip: single fused scale (EUP sqrt/rsqrt, no div,
        #     zero-safe; mathematically the identity up to rounding) ---
        s = real * real + imag * imag
        scale = jnp.sqrt(s) * lax.rsqrt(jnp.maximum(s, 1e-30))
        spec_scaled = jnp.concatenate([real * scale, imag * scale], axis=1)

        # --- inverse windowed DFT: one fused MXU matmul ---
        seg = jnp.dot(spec_scaled, iri_ref[...],
                      preferred_element_type=jnp.float32)            # (TFp, N)

        # --- vectorized overlap-add within the tile ---
        # out chunk r = seg[r, hop:] + seg[r+1, :hop]; row TF is the redundant
        # boundary frame (zero once past the last real frame), so the carry
        # into the tile's last chunk is computed locally (tiles stay parallel).
        outc = seg[1:TFp, :hop] + seg[0:TF, hop:]                    # (TF, hop)

        b = pl.program_id(1)

        # NOTE: the reference's `outputs[coffidx] = outputs[coffidx]/coff[coffidx]`
        # uses advanced indexing with indices derived from coff (batch dim 1), so
        # ONLY batch element 0 gets normalized. Reproduced faithfully; the
        # normalizer is a host-precomputed masked reciprocal -> one multiply.
        @pl.when(b == 0)
        def _():
            out_ref[0] = outc * norm_ref[...]

        @pl.when(b != 0)
        def _():
            out_ref[0] = outc

    return kernel


# ----------------------------------------------------------------------------
# Wrapper (glue): host-side enframe/tiling, BlockSpecs, pallas_call.
# ----------------------------------------------------------------------------
def stft_roundtrip(x, params, *, win_hop, fft_len, frame_tile=256):
    Wri, Iri, norm, _ = params
    B, T = x.shape
    N, hop = fft_len, win_hop
    assert N == 2 * hop, "vectorized enframe/OLA assumes win_hop == fft_len // 2"
    assert T >= N
    dim_pad2 = Wri.shape[1]
    dim_pad = dim_pad2 // 2

    F = (T - N) // hop + 1                 # frames from conv1d stride=hop
    C = F + 1                              # hop-chunks covering all frames
    out_len = F * hop                      # == min(L, pad_amount+T) - pad_amount

    # Frame tile: multiple of 8 (sublane), default 256 (v7x-sized MXU M dim).
    TF = max(8, (min(frame_tile, _round_up(F, 8)) // 8) * 8)
    nt = -(-F // TF)                       # number of frame tiles
    TFp = TF + 1                           # owned frames + 1 OLA boundary frame

    # Host-side layout plumbing: enframe (hop == N/2: frame f = [chunk f|chunk f+1]),
    # zero-pad past the last frame, then gather per-tile (TFp, N) frame slabs
    # (consecutive tiles overlap by exactly one frame -> recomputed, not carried).
    x = jnp.asarray(x, jnp.float32)
    chunks = x[:, :C * hop].reshape(B, C, hop)
    frames = jnp.concatenate([chunks[:, :F], chunks[:, 1:F + 1]], axis=-1)      # (B, F, N)
    frames = jnp.concatenate(
        [frames, jnp.zeros((B, nt * TF + 1 - F, N), jnp.float32)], axis=1)      # (B, nt*TF+1, N)
    f_idx = np.arange(nt)[:, None] * TF + np.arange(TFp)[None, :]               # (nt, TFp)
    frames_t = frames[:, jnp.asarray(f_idx)]                                    # (B, nt, TFp, N)

    norm_p = jnp.concatenate(
        [jnp.asarray(norm), jnp.ones((nt * TF - F, hop), jnp.float32)], axis=0)  # (nt*TF, hop)

    Wri_j, Iri_j = jnp.asarray(Wri), jnp.asarray(Iri)

    kernel = _build_kernel(TF, TFp, hop, N, dim_pad)

    # Explicit scoped-VMEM budget from the chosen tile sizes (weights
    # single-buffered + 2-deep tile buffers + in-kernel temporaries), clamped
    # to stay inside v7x's 64 MiB physical VMEM with headroom.
    f32 = 4
    w_bytes = 2 * N * dim_pad2 * f32                       # Wri + Iri, single-buffered
    tile_bytes = 2 * (TFp * N + 2 * TF * hop) * f32        # double-buffered I/O tiles
    interm_bytes = (4 * TFp * dim_pad2 + 2 * TFp * N) * f32
    est = w_bytes + tile_bytes + interm_bytes + (2 << 20)
    vmem_limit = int(min(max(est, 32 << 20), 56 << 20))

    cost = pl.CostEstimate(
        flops=int(4 * B * nt * TFp * N * dim_pad2),                    # 2 matmuls/tile
        transcendentals=int(2 * B * nt * TFp * dim_pad),               # sqrt + rsqrt
        bytes_accessed=int((B * nt * TFp * N + 2 * N * dim_pad2
                            + 2 * B * nt * TF * hop) * f32))

    def call(weight_buffers):
        # Single-buffer the grid-invariant weight operands (their block index
        # never changes), freeing ~half the weight VMEM for bigger frame tiles.
        wkw = {"pipeline_mode": pl.Buffered(1)} if weight_buffers == 1 else {}
        return pl.pallas_call(
            kernel,
            out_shape=jax.ShapeDtypeStruct((B, nt * TF, hop), jnp.float32),
            grid=(nt, B),                  # frame-tile axis leading -> megacore
            in_specs=[
                pl.BlockSpec((1, 1, TFp, N), lambda t, b: (b, t, 0, 0)),
                pl.BlockSpec((N, dim_pad2), lambda t, b: (0, 0), **wkw),
                pl.BlockSpec((dim_pad2, N), lambda t, b: (0, 0), **wkw),
                pl.BlockSpec((TF, hop), lambda t, b: (t, 0)),
            ],
            out_specs=pl.BlockSpec((1, TF, hop), lambda t, b: (b, t, 0)),
            compiler_params=pltpu.CompilerParams(
                dimension_semantics=("parallel", "parallel"),
                vmem_limit_bytes=vmem_limit),
            cost_estimate=cost,
        )(frames_t, Wri_j, Iri_j, norm_p)

    try:
        out = call(1)
    except Exception:
        # Fallback for JAX builds that reject single-buffering via Buffered(1);
        # identical semantics, weights just stay default double-buffered.
        out = call(2)

    return out[:, :F].reshape(B, out_len)   # (B, out_len), matches squeeze(dim=1)


# ----------------------------------------------------------------------------
# Pure-numpy reference mirroring the PyTorch forward (real atan2/cos/sin,
# explicit OLA loops, and the reference's batch-0-only normalization quirk).
# ----------------------------------------------------------------------------
def numpy_reference(x, params, *, win_hop, fft_len):
    Wri, Iri, _norm, pw = params
    B, T = x.shape
    N, hop = fft_len, win_hop
    dim = N // 2 + 1
    dim_pad = Wri.shape[1] // 2
    F = (T - N) // hop + 1
    L = (F - 1) * hop + N
    rm_start, rm_end = N // 2, N // 2 + T

    Wr, Wi = Wri[:, :dim], Wri[:, dim_pad:dim_pad + dim]
    Ir, Ii = Iri[:dim], Iri[dim_pad:dim_pad + dim]

    frames = np.stack([x[:, f * hop: f * hop + N] for f in range(F)], axis=1)  # (B,F,N)
    real = frames @ Wr
    imag = frames @ Wi
    mag = np.sqrt(real ** 2 + imag ** 2)
    phase = np.arctan2(imag, real)
    re = mag * np.cos(phase)
    im = mag * np.sin(phase)
    seg = re @ Ir + im @ Ii                                                     # (B,F,N)

    out = np.zeros((B, L), np.float32)
    coff = np.zeros((L,), np.float32)
    for f in range(F):
        out[:, f * hop: f * hop + N] += seg[:, f].astype(np.float32)
        coff[f * hop: f * hop + N] += pw
    out = out[:, rm_start:rm_end]
    coff = coff[rm_start:rm_end]
    msk = coff > 1e-7
    out[0, msk] = out[0, msk] / coff[msk]      # reference's batch-0-only quirk
    return out


if __name__ == "__main__":
    # Scaled-down config consistent with the module defaults
    # (win_len == fft_len, hop == win_len // 2, mode='continue', 'hamm' window,
    #  win_sqrt=False, pad_center=False).
    WIN_LEN, WIN_HOP, FFT_LEN = 32, 16, 32
    B, T = 2, 256
    F = (T - FFT_LEN) // WIN_HOP + 1

    params = make_stft_params(WIN_LEN, WIN_HOP, FFT_LEN, F)

    key = jax.random.PRNGKey(0)
    x = jax.random.normal(key, (B, T), dtype=jnp.float32)

    # frame_tile=8 -> 2 frame tiles, so the cross-tile OLA boundary and the
    # zero-padded partial last tile are actually exercised at toy size.
    out = stft_roundtrip(x, params, win_hop=WIN_HOP, fft_len=FFT_LEN, frame_tile=8)
    out = jax.block_until_ready(out)

    ref = numpy_reference(np.asarray(x, np.float32), params,
                          win_hop=WIN_HOP, fft_len=FFT_LEN)

    assert out.shape == ref.shape, (out.shape, ref.shape)
    np.testing.assert_allclose(np.asarray(out), ref, rtol=1e-4, atol=1e-3)

    print("KERNEL_OK")
</pallas_src>

<mosaic_0001>
module attributes {stable_mosaic.version = 11 : i64} {
  func.func @kernel(%arg0: i32, %arg1: i32, %arg2: memref<1x1x9x32xf32, #tpu.memory_space<vmem>>, %arg3: memref<32x256xf32, #tpu.memory_space<vmem>>, %arg4: memref<256x32xf32, #tpu.memory_space<vmem>>, %arg5: memref<8x16xf32, #tpu.memory_space<vmem>>, %arg6: memref<1x8x16xf32, #tpu.memory_space<vmem>>) attributes {dimension_semantics = [#tpu.dimension_semantics<parallel>, #tpu.dimension_semantics<parallel>], iteration_bounds = array<i64: 2, 2>, scalar_prefetch = 0 : i64, scratch_operands = 0 : i64, tpu.core_type = #tpu.core_type<tc>, window_params = [{transform_indices = @transform_0, window_bounds = array<i64: 1, 1, 9, 32>}, {pipeline_mode = #tpu.pipeline_mode<synchronous>, transform_indices = @transform_1, window_bounds = array<i64: 32, 256>}, {pipeline_mode = #tpu.pipeline_mode<synchronous>, transform_indices = @transform_2, window_bounds = array<i64: 256, 32>}, {transform_indices = @transform_3, window_bounds = array<i64: 8, 16>}, {transform_indices = @transform_4, window_bounds = array<i64: 1, 8, 16>}]} {
    %c0 = arith.constant 0 : index
    %c0_0 = arith.constant 0 : index
    %c0_1 = arith.constant 0 : index
    %c0_2 = arith.constant 0 : index
    %0 = vector.load %arg2[%c0, %c0_0, %c0_1, %c0_2] : memref<1x1x9x32xf32, #tpu.memory_space<vmem>>, vector<1x1x9x32xf32>
    %1 = vector.shape_cast %0 : vector<1x1x9x32xf32> to vector<9x32xf32>
    %c0_3 = arith.constant 0 : index
    %c0_4 = arith.constant 0 : index
    %2 = vector.load %arg3[%c0_3, %c0_4] : memref<32x256xf32, #tpu.memory_space<vmem>>, vector<32x256xf32>
    %cst = arith.constant dense<0.000000e+00> : vector<9x256xf32>
    %3 = tpu.matmul %1, %2, %cst {dimension_numbers = #tpu.dot_dimension_numbers<[1], [0], [0], [1], [0, 0, 1, 1], [], []>} : vector<9x32xf32>, vector<32x256xf32>, vector<9x256xf32> -> vector<9x256xf32>
    %4 = vector.extract_strided_slice %3 {offsets = [0, 0], sizes = [9, 128], strides = [1, 1]} : vector<9x256xf32> to vector<9x128xf32>
    %5 = vector.extract_strided_slice %3 {offsets = [0, 128], sizes = [9, 128], strides = [1, 1]} : vector<9x256xf32> to vector<9x128xf32>
    %6 = arith.mulf %4, %4 : vector<9x128xf32>
    %7 = arith.mulf %5, %5 : vector<9x128xf32>
    %8 = arith.addf %6, %7 : vector<9x128xf32>
    %9 = math.sqrt %8 : vector<9x128xf32>
    %cst_5 = arith.constant 1.000000e-30 : f32
    %10 = vector.broadcast %cst_5 : f32 to vector<9x128xf32>
    %11 = arith.maximumf %8, %10 : vector<9x128xf32>
    %12 = math.rsqrt %11 : vector<9x128xf32>
    %13 = arith.mulf %9, %12 : vector<9x128xf32>
    %14 = arith.mulf %4, %13 : vector<9x128xf32>
    %15 = arith.mulf %5, %13 : vector<9x128xf32>
    %16 = tpu.concatenate %14, %15 in 1 : vector<9x128xf32>, vector<9x128xf32> -> vector<9x256xf32>
    %c0_6 = arith.constant 0 : index
    %c0_7 = arith.constant 0 : index
    %17 = vector.load %arg4[%c0_6, %c0_7] : memref<256x32xf32, #tpu.memory_space<vmem>>, vector<256x32xf32>
    %cst_8 = arith.constant dense<0.000000e+00> : vector<9x32xf32>
    %18 = tpu.matmul %16, %17, %cst_8 {dimension_numbers = #tpu.dot_dimension_numbers<[1], [0], [0], [1], [0, 0, 1, 1], [], []>} : vector<9x256xf32>, vector<256x32xf32>, vector<9x32xf32> -> vector<9x32xf32>
    %19 = vector.extract_strided_slice %18 {offsets = [1, 0], sizes = [8, 16], strides = [1, 1]} : vector<9x32xf32> to vector<8x16xf32>
    %20 = vector.extract_strided_slice %18 {offsets = [0, 16], sizes = [8, 16], strides = [1, 1]} : vector<9x32xf32> to vector<8x16xf32>
    %21 = arith.addf %19, %20 : vector<8x16xf32>
    %c0_i32 = arith.constant 0 : i32
    %22 = arith.cmpi eq, %arg1, %c0_i32 : i32
    %23 = arith.extui %22 : i1 to i32
    %c0_i32_9 = arith.constant 0 : i32
    %24 = arith.cmpi ne, %23, %c0_i32_9 : i32
    scf.if %24 {
      %c0_12 = arith.constant 0 : index
      %c0_13 = arith.constant 0 : index
      %28 = vector.load %arg5[%c0_12, %c0_13] : memref<8x16xf32, #tpu.memory_space<vmem>>, vector<8x16xf32>
      %29 = arith.mulf %21, %28 : vector<8x16xf32>
      %c0_14 = arith.constant 0 : index
      %c0_15 = arith.constant 0 : index
      %c0_16 = arith.constant 0 : index
      %30 = vector.load %arg6[%c0_14, %c0_15, %c0_16] : memref<1x8x16xf32, #tpu.memory_space<vmem>>, vector<1x8x16xf32>
      %31 = vector.shape_cast %30 : vector<1x8x16xf32> to vector<8x16xf32>
      %32 = vector.shape_cast %29 : vector<8x16xf32> to vector<1x8x16xf32>
      tpu.vector_store %arg6[%c0_14, %c0_15, %c0_16], %32 {strides = array<i32>} : memref<1x8x16xf32, #tpu.memory_space<vmem>>, vector<1x8x16xf32>,
    } else {
    }
    %c0_i32_10 = arith.constant 0 : i32
    %25 = arith.cmpi ne, %arg1, %c0_i32_10 : i32
    %26 = arith.extui %25 : i1 to i32
    %c0_i32_11 = arith.constant 0 : i32
    %27 = arith.cmpi ne, %26, %c0_i32_11 : i32
    scf.if %27 {
      %c0_12 = arith.constant 0 : index
      %c0_13 = arith.constant 0 : index
      %c0_14 = arith.constant 0 : index
      %28 = vector.load %arg6[%c0_12, %c0_13, %c0_14] : memref<1x8x16xf32, #tpu.memory_space<vmem>>, vector<1x8x16xf32>
      %29 = vector.shape_cast %28 : vector<1x8x16xf32> to vector<8x16xf32>
      %30 = vector.shape_cast %21 : vector<8x16xf32> to vector<1x8x16xf32>
      tpu.vector_store %arg6[%c0_12, %c0_13, %c0_14], %30 {strides = array<i32>} : memref<1x8x16xf32, #tpu.memory_space<vmem>>, vector<1x8x16xf32>,
    } else {
    }
    return
  }
  func.func @transform_0(%arg0: i32, %arg1: i32) -> (i32, i32, i32, i32) {
    %c0_i32 = arith.constant 0 : i32
    %c0_i32_0 = arith.constant 0 : i32
    %c0_i32_1 = arith.constant 0 : i32
    return %arg1, %arg0, %c0_i32, %c0_i32_0 : i32, i32, i32, i32
  }
  func.func @transform_1(%arg0: i32, %arg1: i32) -> (i32, i32) {
    %c0_i32 = arith.constant 0 : i32
    %c0_i32_0 = arith.constant 0 : i32
    %c0_i32_1 = arith.constant 0 : i32
    return %c0_i32, %c0_i32_0 : i32, i32
  }
  func.func @transform_2(%arg0: i32, %arg1: i32) -> (i32, i32) {
    %c0_i32 = arith.constant 0 : i32
    %c0_i32_0 = arith.constant 0 : i32
    %c0_i32_1 = arith.constant 0 : i32
    return %c0_i32, %c0_i32_0 : i32, i32
  }
  func.func @transform_3(%arg0: i32, %arg1: i32) -> (i32, i32) {
    %c0_i32 = arith.constant 0 : i32
    %c0_i32_0 = arith.constant 0 : i32
    return %arg0, %c0_i32 : i32, i32
  }
  func.func @transform_4(%arg0: i32, %arg1: i32) -> (i32, i32, i32) {
    %c0_i32 = arith.constant 0 : i32
    %c0_i32_0 = arith.constant 0 : i32
    return %arg1, %arg0, %c0_i32 : i32, i32, i32
  }
}

module attributes {stable_mosaic.version = 11 : i64} {
  func.func @kernel(%arg0: i32, %arg1: i32, %arg2: memref<1x1x9x32xf32, #tpu.memory_space<vmem>>, %arg3: memref<32x256xf32, #tpu.memory_space<vmem>>, %arg4: memref<256x32xf32, #tpu.memory_space<vmem>>, %arg5: memref<8x16xf32, #tpu.memory_space<vmem>>, %arg6: memref<1x8x16xf32, #tpu.memory_space<vmem>>) attributes {dimension_semantics = [#tpu.dimension_semantics<parallel>, #tpu.dimension_semantics<parallel>], iteration_bounds = array<i64: 2, 2>, scalar_prefetch = 0 : i64, scratch_operands = 0 : i64, tpu.core_type = #tpu.core_type<tc>, window_params = [{transform_indices = @transform_0, window_bounds = array<i64: 1, 1, 9, 32>}, {pipeline_mode = #tpu.pipeline_mode<synchronous>, transform_indices = @transform_1, window_bounds = array<i64: 32, 256>}, {pipeline_mode = #tpu.pipeline_mode<synchronous>, transform_indices = @transform_2, window_bounds = array<i64: 256, 32>}, {transform_indices = @transform_3, window_bounds = array<i64: 8, 16>}, {transform_indices = @transform_4, window_bounds = array<i64: 1, 8, 16>}]} {
    %c0 = arith.constant 0 : index
    %c0_0 = arith.constant 0 : index
    %c0_1 = arith.constant 0 : index
    %c0_2 = arith.constant 0 : index
    %0 = vector.load %arg2[%c0, %c0_0, %c0_1, %c0_2] : memref<1x1x9x32xf32, #tpu.memory_space<vmem>>, vector<1x1x9x32xf32>
    %1 = vector.shape_cast %0 : vector<1x1x9x32xf32> to vector<9x32xf32>
    %c0_3 = arith.constant 0 : index
    %c0_4 = arith.constant 0 : index
    %2 = vector.load %arg3[%c0_3, %c0_4] : memref<32x256xf32, #tpu.memory_space<vmem>>, vector<32x256xf32>
    %cst = arith.constant dense<0.000000e+00> : vector<9x256xf32>
    %3 = tpu.matmul %1, %2, %cst {dimension_numbers = #tpu.dot_dimension_numbers<[1], [0], [0], [1], [0, 0, 1, 1], [], []>} : vector<9x32xf32>, vector<32x256xf32>, vector<9x256xf32> -> vector<9x256xf32>
    %4 = vector.extract_strided_slice %3 {offsets = [0, 0], sizes = [9, 128], strides = [1, 1]} : vector<9x256xf32> to vector<9x128xf32>
    %5 = vector.extract_strided_slice %3 {offsets = [0, 128], sizes = [9, 128], strides = [1, 1]} : vector<9x256xf32> to vector<9x128xf32>
    %6 = arith.mulf %4, %4 : vector<9x128xf32>
    %7 = arith.mulf %5, %5 : vector<9x128xf32>
    %8 = arith.addf %6, %7 : vector<9x128xf32>
    %9 = math.sqrt %8 : vector<9x128xf32>
    %cst_5 = arith.constant 1.000000e-30 : f32
    %10 = vector.broadcast %cst_5 : f32 to vector<9x128xf32>
    %11 = arith.maximumf %8, %10 : vector<9x128xf32>
    %12 = math.rsqrt %11 : vector<9x128xf32>
    %13 = arith.mulf %9, %12 : vector<9x128xf32>
    %14 = arith.mulf %4, %13 : vector<9x128xf32>
    %15 = arith.mulf %5, %13 : vector<9x128xf32>
    %16 = tpu.concatenate %14, %15 in 1 : vector<9x128xf32>, vector<9x128xf32> -> vector<9x256xf32>
    %c0_6 = arith.constant 0 : index
    %c0_7 = arith.constant 0 : index
    %17 = vector.load %arg4[%c0_6, %c0_7] : memref<256x32xf32, #tpu.memory_space<vmem>>, vector<256x32xf32>
    %cst_8 = arith.constant dense<0.000000e+00> : vector<9x32xf32>
    %18 = tpu.matmul %16, %17, %cst_8 {dimension_numbers = #tpu.dot_dimension_numbers<[1], [0], [0], [1], [0, 0, 1, 1], [], []>} : vector<9x256xf32>, vector<256x32xf32>, vector<9x32xf32> -> vector<9x32xf32>
    %19 = vector.extract_strided_slice %18 {offsets = [1, 0], sizes = [8, 16], strides = [1, 1]} : vector<9x32xf32> to vector<8x16xf32>
    %20 = vector.extract_strided_slice %18 {offsets = [0, 16], sizes = [8, 16], strides = [1, 1]} : vector<9x32xf32> to vector<8x16xf32>
    %21 = arith.addf %19, %20 : vector<8x16xf32>
    %c0_i32 = arith.constant 0 : i32
    %22 = arith.cmpi eq, %arg1, %c0_i32 : i32
    %23 = arith.extui %22 : i1 to i32
    %c0_i32_9 = arith.constant 0 : i32
    %24 = arith.cmpi ne, %23, %c0_i32_9 : i32
    scf.if %24 {
      %c0_12 = arith.constant 0 : index
      %c0_13 = arith.constant 0 : index
      %28 = vector.load %arg5[%c0_12, %c0_13] : memref<8x16xf32, #tpu.memory_space<vmem>>, vector<8x16xf32>
      %29 = arith.mulf %21, %28 : vector<8x16xf32>
      %c0_14 = arith.constant 0 : index
      %c0_15 = arith.constant 0 : index
      %c0_16 = arith.constant 0 : index
      %30 = vector.load %arg6[%c0_14, %c0_15, %c0_16] : memref<1x8x16xf32, #tpu.memory_space<vmem>>, vector<1x8x16xf32>
      %31 = vector.shape_cast %30 : vector<1x8x16xf32> to vector<8x16xf32>
      %32 = vector.shape_cast %29 : vector<8x16xf32> to vector<1x8x16xf32>
      tpu.vector_store %arg6[%c0_14, %c0_15, %c0_16], %32 {strides = array<i32>} : memref<1x8x16xf32, #tpu.memory_space<vmem>>, vector<1x8x16xf32>,
    } else {
    }
    %c0_i32_10 = arith.constant 0 : i32
    %25 = arith.cmpi ne, %arg1, %c0_i32_10 : i32
    %26 = arith.extui %25 : i1 to i32
    %c0_i32_11 = arith.constant 0 : i32
    %27 = arith.cmpi ne, %26, %c0_i32_11 : i32
    scf.if %27 {
      %c0_12 = arith.constant 0 : index
      %c0_13 = arith.constant 0 : index
      %c0_14 = arith.constant 0 : index
      %28 = vector.load %arg6[%c0_12, %c0_13, %c0_14] : memref<1x8x16xf32, #tpu.memory_space<vmem>>, vector<1x8x16xf32>
      %29 = vector.shape_cast %28 : vector<1x8x16xf32> to vector<8x16xf32>
      %30 = vector.shape_cast %21 : vector<8x16xf32> to vector<1x8x16xf32>
      tpu.vector_store %arg6[%c0_12, %c0_13, %c0_14], %30 {strides = array<i32>} : memref<1x8x16xf32, #tpu.memory_space<vmem>>, vector<1x8x16xf32>,
    } else {
    }
    return
  }
  func.func @transform_0(%arg0: i32, %arg1: i32) -> (i32, i32, i32, i32) {
    %c0_i32 = arith.constant 0 : i32
    %c0_i32_0 = arith.constant 0 : i32
    %c0_i32_1 = arith.constant 0 : i32
    return %arg1, %arg0, %c0_i32, %c0_i32_0 : i32, i32, i32, i32
  }
  func.func @transform_1(%arg0: i32, %arg1: i32) -> (i32, i32) {
    %c0_i32 = arith.constant 0 : i32
    %c0_i32_0 = arith.constant 0 : i32
    %c0_i32_1 = arith.constant 0 : i32
    return %c0_i32, %c0_i32_0 : i32, i32
  }
  func.func @transform_2(%arg0: i32, %arg1: i32) -> (i32, i32) {
    %c0_i32 = arith.constant 0 : i32
    %c0_i32_0 = arith.constant 0 : i32
    %c0_i32_1 = arith.constant 0 : i32
    return %c0_i32, %c0_i32_0 : i32, i32
  }
  func.func @transform_3(%arg0: i32, %arg1: i32) -> (i32, i32) {
    %c0_i32 = arith.constant 0 : i32
    %c0_i32_0 = arith.constant 0 : i32
    return %arg0, %c0_i32 : i32, i32
  }
  func.func @transform_4(%arg0: i32, %arg1: i32) -> (i32, i32, i32) {
    %c0_i32 = arith.constant 0 : i32
    %c0_i32_0 = arith.constant 0 : i32
    return %arg1, %arg0, %c0_i32 : i32, i32, i32
  }
}

</mosaic_0001>

<bundles_post_ra>
// kernel: tpu_custom_call.1
= control target key start
LH: loop header
LB: loop body
LE: loop exit
PB: predicated region body
PF: predicated region fallthrough
CT: control target
= control target key end

     0   :  { %s1060_s0 = inlined_call_operand.vmem [shape: f32[2,2,9,32], index: 0, kind: input, shape index: {}]   ;;  %s1061_s1 = inlined_call_operand.vmem [shape: f32[32,256], index: 1, kind: input, shape index: {}]   ;;  %s1062_s2 = inlined_call_operand.vmem [shape: f32[256,32], index: 2, kind: input, shape index: {}]   ;;  %s1063_s3 = inlined_call_operand.vmem [shape: f32[16,16], index: 3, kind: input, shape index: {}]   ;;  %s1064_s4 = inlined_call_operand.hbm [shape: f32[2,16,16], index: 4, kind: output, shape index: {}]  }
   0x1   :  { %1066 = sst [smem:[#allocation5_spill]] %s1061_s1 }
   0x2   :  { %9 = vsyncpa [#allocation3], 0 }
   0x3   :  { %11 = vsyncpa [#allocation3 + $0x1], 0  ;;  %s803_s15 = smov 0   ;;  %s805_s16 = smov 0  }
   0x4   :  { %s807_s17 = smov 0   ;;  %s809_s18 = smov 0  }
   0x5   :  { %s811_s19 = smov 0   ;;  %s813_s20 = smov 0  }
   0x6   :  { %s815_s21 = smov 0   ;;  %s817_s22 = smov 0  }
   0x7 LB: > { %s580_s23 = sadd.s32 4294967295, %s775_s22   ;;  %s581_s24 = sadd.s32 4294967294, %s775_s22   ;;  %s775_s22 = sphi %s817_s22, %s17_s22   ;;  %s771_s21 = sphi %s815_s21, %s1077_s21   ;;  %s767_s20 = sphi %s813_s20, %s1076_s20   ;;  %s763_s19 = sphi %s811_s19, %s1075_s19   ;;  %s759_s18 = sphi %s809_s18, %s1074_s18   ;;  %s755_s17 = sphi %s807_s17, %s1073_s17   ;;  %s751_s16 = sphi %s805_s16, %s1072_s16   ;;  %s747_s15 = sphi %s803_s15, %s1071_s15  }
   0x8   : > { %s26_s25 = sadd.s32 1, %s767_s20  ;;  %s29_s26 = sadd.s32 1, %s771_s21 }
   0x9   : > { %p27_p0 = scmp.ge.s32.totalorder %s26_s25, 2  ;;  %p144_p1 = scmp.ne.s32.totalorder %s755_s17, %s751_s16 }
   0xa   : > { %p145_p2 = scmp.eq.s32.totalorder %s580_s23, 3  ;;  %p150_p5 = scmp.ne.s32.totalorder %s751_s16, %s747_s15 }
   0xb   : > { %s1079_s25 = smov (%p27_p0, %s26_s25), 0  ;;  %s1081_s26 = smov (!%p27_p0, %s29_s26), %s771_s21 }
   0xc   : > { %s129_s27 = ssub.s32 %s767_s20, %s1079_s25  ;;  %p854_p3 = por %p145_p2, %p144_p1 }
   0xd   : > { %p31_p4 = scmp.ge.s32.totalorder %s1081_s26, 2  ;;  %p151_p6 = scmp.eq.s32.totalorder %s581_s24, 3 }
   0xe   : > { %p584_p7 = scmp.ge.s32.totalorder %s775_s22, 1  ;;  %p194_p9 = scmp.lt.s32.totalorder %s775_s22, 5 }
   0xf   : > { %s1083_s26 = smov (%p31_p4, %s1081_s26), 0  ;;  %p863_p8 = por %p151_p6, %p150_p5 }
  0x10   : > { %s130_s30 = ssub.s32 %s771_s21, %s1083_s26  ;;  %s134_s5 = sadd.s32 1, %s755_s17 }
  0x11   : > { %s131_s6 = sor.u32 %s130_s30, %s129_s27  ;;  %p195_p10 = pnand %p584_p7, %p194_p9 }
  0x12   : > { %p132_p11 = scmp.eq.s32.totalorder %s131_s6, 0  ;;  %s1065_s8 = sand.u32 (!%p195_p10), 1, %s751_s16  }
  0x13   : > { %198 = sbr.rel (%p195_p10) target bundleno = 474 (0x1da), region = 36  ;;  %s1069_s1 = sld [smem:[#allocation5_spill]] (!%p195_p10) }
  0x14   : > { %s872_s7 = scalar_select %p132_p11, %s755_s17, %s134_s5  }
  0x15   : > { %p228_p12 = scmp.lt.s32.totalorder (!%p195_p10), %s759_s18, 1  ;;  %s887_s23 = sshll.u32 (!%p195_p10), %s1065_s8, 3 }
  0x16   : > { %p230_p13 = scmp.lt.s32.totalorder (!%p195_p10), %s763_s19, 1  ;;  %p594_p0 = scmp.ne.s32.totalorder (!%p195_p10), %s759_s18, 0 }
  0x18   : > { %v377_v6 = vld [vmem:[%s1062_s2 + $0x78] sm:$0xff]  ;;  %s229_s12 = scalar_select %p228_p12, %s759_s18, 1  ;;  %vm251_vm0 = vcmask 261120   ;;  %v376_v12 = vld [vmem:[%s1062_s2 + $0x70] sm:$0xff]  ;;  %v375_v14 = vld [vmem:[%s1062_s2 + $0x68] sm:$0xff] }
  0x19   : > { %v249_v0 = vld [vmem:[%s1069_s1 + $0x30] sm:$0xff]  ;;  %v250_v1 = vld [vmem:[%s1069_s1 + $0x38] sm:$0xff]  ;;  %v247_v2 = vld [vmem:[%s1069_s1 + $0x20] sm:$0xff]  ;;  %s231_s6 = scalar_select %p230_p13, %s763_s19, 1  ;;  %394 = vmatpush.msra.mxu2 %v377_v6 }
  0x1a   : > { %270 = vmatpush.msra.mxu0 %v249_v0  ;;  %293 = vmatpush.msra.mxu1 %v250_v1  ;;  %v248_v3 = vld [vmem:[%s1069_s1 + $0x28] sm:$0xff]  ;;  %v245_v4 = vld [vmem:[%s1069_s1 + $0x10] sm:$0xff]  ;;  %v246_v5 = vld [vmem:[%s1069_s1 + $0x18] sm:$0xff]  ;;  %s587_s9 = sshll.u32 %s229_s12, 2  ;;  %s777_s12 = smov 112  }
  0x1b   : > { %v393_v7 = vld [vmem:[%s1062_s2 + $0xf8] sm:$0xff]  ;;  %v243_v8 = vld [vmem:[%s1069_s1] sm:$0xff]  ;;  %v244_v9 = vld [vmem:[%s1069_s1 + $0x8] sm:$0xff]  ;;  %s586_s10 = sshll.u32 %s231_s6, 1  ;;  %s589_s11 = sshll.u32 %s231_s6, 3  ;;  %395 = vmatpush.msra.mxu2 %v376_v12 }
  0x1c   : > { %271 = vmatpush.msra.mxu0 %v247_v2  ;;  %294 = vmatpush.msra.mxu1 %v248_v3  ;;  %s234_s13 = sadd.s32 %s587_s9, %s586_s10  ;;  %s916_s24 = scalar_lea.vmem %s1063_s3, %s589_s11  ;;  %v392_v13 = vld [vmem:[%s1062_s2 + $0xf0] sm:$0xff]  ;;  %v391_v15 = vld [vmem:[%s1062_s2 + $0xe8] sm:$0xff]  ;;  %v374_v16 = vld [vmem:[%s1062_s2 + $0x60] sm:$0xff] }
  0x1d   : > { %417 = vmatpush.msra.mxu3 %v393_v7  ;;  %s588_s27 = sshll.u32 %s234_s13, 3  ;;  %396 = vmatpush.msra.mxu2 %v375_v14  ;;  %v390_v17 = vld [vmem:[%s1062_s2 + $0xe0] sm:$0xff]  ;;  %v373_v18 = vld [vmem:[%s1062_s2 + $0x58] sm:$0xff]  ;;  %v372_v20 = vld [vmem:[%s1062_s2 + $0x50] sm:$0xff]  ;;  %s227_s6 = scalar_lea.vmem [#allocation2], %s887_s23 }
  0x1e   : > { %272 = vmatpush.msra.mxu0 %v245_v4  ;;  %295 = vmatpush.msra.mxu1 %v246_v5  ;;  %s236_s1 = scalar_lea.vmem %s1060_s0, %s588_s27  ;;  %v389_v19 = vld [vmem:[%s1062_s2 + $0xd8] sm:$0xff]  ;;  %v388_v21 = vld [vmem:[%s1062_s2 + $0xd0] sm:$0xff]  ;;  %v371_v22 = vld [vmem:[%s1062_s2 + $0x48] sm:$0xff] }
  0x1f   : > { %v241_v10 = vld [vmem:[%s236_s1] sm:$0xff]  ;;  %v242_v11 = vld [vmem:[%s236_s1 + $0x8] sm:$0x1]  ;;  %418 = vmatpush.msra.mxu3 %v392_v13  ;;  %397 = vmatpush.msra.mxu2 %v374_v16  ;;  %v369_v26 = vld [vmem:[%s1062_s2 + $0x38] sm:$0xff] }
  0x20   : > { %273 = vmatpush.msra.mxu0 %v243_v8  ;;  %296 = vmatpush.msra.mxu1 %v244_v9  ;;  %v387_v23 = vld [vmem:[%s1062_s2 + $0xc8] sm:$0xff]  ;;  %v370_v24 = vld [vmem:[%s1062_s2 + $0x40] sm:$0xff]  ;;  %v385_v27 = vld [vmem:[%s1062_s2 + $0xb8] sm:$0xff] }
  0x21   : > { %590 = vmatmul.msk.f32.vlgmr.msra.gmra.mxu0 %vm251_vm0, %v241_v10  ;;  %592 = vmatmul.msk.f32.vlgmr.msra.gmra.mxu1 %vm251_vm0, %v241_v10  ;;  %v386_v25 = vld [vmem:[%s1062_s2 + $0xc0] sm:$0xff]  ;;  %v368_v28 = vld [vmem:[%s1062_s2 + $0x30] sm:$0xff]  ;;  %v367_v30 = vld [vmem:[%s1062_s2 + $0x28] sm:$0xff] }
  0x22   : > { %419 = vmatpush.msra.mxu3 %v391_v15  ;;  %398 = vmatpush.msra.mxu2 %v373_v18  ;;  %v384_v29 = vld [vmem:[%s1062_s2 + $0xb0] sm:$0xff]  ;;  %v383_v31 = vld [vmem:[%s1062_s2 + $0xa8] sm:$0xff]  ;;  %v366_v32 = vld [vmem:[%s1062_s2 + $0x20] sm:$0xff] }
  0x23   : > { %v382_v33 = vld [vmem:[%s1062_s2 + $0xa0] sm:$0xff]  ;;  %v365_v34 = vld [vmem:[%s1062_s2 + $0x18] sm:$0xff]  ;;  %v364_v36 = vld [vmem:[%s1062_s2 + $0x10] sm:$0xff] }
  0x24   : > { %420 = vmatpush.msra.mxu3 %v390_v17  ;;  %399 = vmatpush.msra.mxu2 %v372_v20  ;;  %v381_v35 = vld [vmem:[%s1062_s2 + $0x98] sm:$0xff]  ;;  %v380_v37 = vld [vmem:[%s1062_s2 + $0x90] sm:$0xff]  ;;  %v363_v38 = vld [vmem:[%s1062_s2 + $0x8] sm:$0xff] }
  0x25   : > { %v379_v39 = vld [vmem:[%s1062_s2 + $0x88] sm:$0xff]  ;;  %v362_v40 = vld [vmem:[%s1062_s2] sm:$0xff] }
  0x26   : > { %421 = vmatpush.msra.mxu3 %v389_v19  ;;  %400 = vmatpush.msra.mxu2 %v371_v22  ;;  %v378_v41 = vld [vmem:[%s1062_s2 + $0x80] sm:$0xff] }
  0x28   : > { %422 = vmatpush.msra.mxu3 %v388_v21  ;;  %401 = vmatpush.msra.mxu2 %v370_v24 }
  0x29   : > { %591 = vmatmul.msk.f32.gmra.mxu0 %vm251_vm0, %v242_v11  ;;  %593 = vmatmul.msk.f32.gmra.mxu1 %vm251_vm0, %v242_v11 }
  0x2a   : > { %423 = vmatpush.msra.mxu3 %v387_v23  ;;  %402 = vmatpush.msra.mxu2 %v369_v26 }
  0x2c   : > { %424 = vmatpush.msra.mxu3 %v386_v25  ;;  %403 = vmatpush.msra.mxu2 %v368_v28 }
  0x2e   : > { %425 = vmatpush.msra.mxu3 %v385_v27  ;;  %404 = vmatpush.msra.mxu2 %v367_v30 }
  0x30   : > { %426 = vmatpush.msra.mxu3 %v384_v29  ;;  %405 = vmatpush.msra.mxu2 %v366_v32 }
  0x32   : > { %427 = vmatpush.msra.mxu3 %v383_v31  ;;  %406 = vmatpush.msra.mxu2 %v365_v34 }
  0x34   : > { %428 = vmatpush.msra.mxu3 %v382_v33  ;;  %407 = vmatpush.msra.mxu2 %v364_v36 }
  0x36   : > { %429 = vmatpush.msra.mxu3 %v381_v35  ;;  %408 = vmatpush.msra.mxu2 %v363_v38 }
  0x38   : > { %430 = vmatpush.msra.mxu3 %v380_v37  ;;  %409 = vmatpush.msra.mxu2 %v362_v40 }
  0x3a   : > { %431 = vmatpush.msra.mxu3 %v379_v39 }
  0x3c   : > { %432 = vmatpush.msra.mxu3 %v378_v41 }
  0x9e   : > { %v275_v42 = vpop.f32.mrf.mxu0  ;;  %v298_v43 = vpop.f32.mrf.mxu1 }
  0x9f   : > { %v304_v44 = vmul.f32 %v275_v42, %v275_v42  ;;  %v306_v45 = vmul.f32 %v298_v43, %v298_v43 }
  0xa1   : > { %v308_v46 = vadd.f32 %v306_v45, %v304_v44 }
  0xa3   : > { %673 = vrsqrt.f32 %v308_v46  ;;  %v334_v47 = vmax.f32 %v308_v46, 1e-30  ;;  %vm317_vm2 = vcmp.eq.f32.partialorder %v308_v46, inf  ;;  %v320_v6 = vand.u32 2147483648, %v308_v46 }
  0xa4   : > { %vm319_vm4 = vcmp.eq.f32.partialorder %v308_v46, 0.0 }
  0xa5   : > { %675 = vrsqrt.f32 %v334_v47  ;;  %vm342_vm3 = vweird.f32 %v334_v47 }
  0xa6   : > { %v278_v48 = vpop.f32.mrf.mxu0  ;;  %v301_v49 = vpop.f32.mrf.mxu1 }
  0xa7   : > { %v305_v50 = vmul.f32 %v278_v48, %v278_v48  ;;  %v307_v51 = vmul.f32 %v301_v49, %v301_v49 }
  0xa9   : > { %v674_v52 = vpop.eup %673  ;;  %v309_v53 = vadd.f32 %v307_v51, %v305_v50 }
  0xaa   : > { %v311_v54 = vmul.f32 %v674_v52, %v308_v46 }
  0xab   : > { %677 = vrsqrt.f32 %v309_v53  ;;  %v676_v55 = vpop.eup %675  ;;  %v335_v57 = vmax.f32 %v309_v53, 1e-30  ;;  %vm329_vm8 = vcmp.eq.f32.partialorder %v309_v53, inf  ;;  %v332_v20 = vand.u32 2147483648, %v309_v53 }
  0xac   : > { %v312_v56 = vmul.f32 %v674_v52, %v311_v54  ;;  %v337_v58 = vmul.f32 %v676_v55, %v334_v47  ;;  %vm343_vm1 = vweird.f32 %v676_v55  ;;  %vm331_vm9 = vcmp.eq.f32.partialorder %v309_v53, 0.0 }
  0xad   : > { %679 = vrsqrt.f32 %v335_v57  ;;  %vm344_vm5 = vmor %vm342_vm3, %vm343_vm1  ;;  %vm352_vm6 = vweird.f32 %v335_v57 }
  0xae   : > { %v313_v59 = vmul.f32 0.5, %v312_v56  ;;  %v338_v60 = vmul.f32 %v676_v55, %v337_v58 }
  0xb0   : > { %v314_v61 = vsub.f32 1.5, %v313_v59  ;;  %v339_v63 = vmul.f32 0.5, %v338_v60 }
  0xb1   : > { %v678_v62 = vpop.eup %677 }
  0xb2   : > { %v315_v0 = vmul.f32 %v674_v52, %v314_v61  ;;  %v323_v1 = vmul.f32 %v678_v62, %v309_v53  ;;  %v340_v2 = vsub.f32 1.5, %v339_v63 }
  0xb3   : > { %v680_v3 = vpop.eup %679 }
  0xb4   : > { %v316_v4 = vmul.f32 %v315_v0, %v308_v46  ;;  %v324_v5 = vmul.f32 %v678_v62, %v323_v1  ;;  %v341_v7 = vmul.f32 %v676_v55, %v340_v2  ;;  %v347_v8 = vmul.f32 %v680_v3, %v335_v57 }
  0xb5   : > { %vm353_vm7 = vweird.f32 %v680_v3 }
  0xb6   : > { %v318_v9 = vsel %vm317_vm2, %v308_v46, %v316_v4  ;;  %v325_v10 = vmul.f32 0.5, %v324_v5  ;;  %v345_v12 = vsel %vm344_vm5, %v676_v55, %v341_v7  ;;  %v348_v13 = vmul.f32 %v680_v3, %v347_v8  ;;  %vm354_vm10 = vmor %vm352_vm6, %vm353_vm7 }
  0xb7   : > { %v321_v11 = vsel %vm319_vm4, %v320_v6, %v318_v9 }
  0xb8   : > { %v356_v14 = vmul.f32 %v345_v12, %v321_v11  ;;  %v326_v15 = vsub.f32 1.5, %v325_v10  ;;  %v349_v16 = vmul.f32 0.5, %v348_v13 }
  0xba   : > { %v358_v17 = vmul.f32 %v356_v14, %v275_v42  ;;  %v360_v18 = vmul.f32 %v356_v14, %v298_v43  ;;  %v327_v19 = vmul.f32 %v678_v62, %v326_v15  ;;  %v350_v21 = vsub.f32 1.5, %v349_v16 }
  0xbc   : > { %410 = vmatmul.f32.vlgmr.msra.gmra.mxu2 %v358_v17  ;;  %433 = vmatmul.f32.vlgmr.msra.gmra.mxu3 %v360_v18  ;;  %v328_v22 = vmul.f32 %v327_v19, %v309_v53  ;;  %v351_v23 = vmul.f32 %v680_v3, %v350_v21 }
  0xbe   : > { %v330_v24 = vsel %vm329_vm8, %v309_v53, %v328_v22  ;;  %v355_v26 = vsel %vm354_vm10, %v680_v3, %v351_v23 }
  0xbf   : > { %v333_v25 = vsel %vm331_vm9, %v332_v20, %v330_v24 }
  0xc0   : > { %v357_v27 = vmul.f32 %v355_v26, %v333_v25 }
  0xc2   : > { %v361_v28 = vmul.f32 %v357_v27, %v301_v49  ;;  %v359_v29 = vmul.f32 %v357_v27, %v278_v48 }
  0xc4   : > { %413 = vmatmul.f32.gmra.mxu2 %v359_v29  ;;  %436 = vmatmul.f32.gmra.mxu3 %v361_v28 }
 0x13f   : > { %v411_v30 = vpop.f32.mrf.mxu2  ;;  %v434_v31 = vpop.f32.mrf.mxu3 }
 0x140   : > { %v435_v32 = vadd.f32 %v434_v31, %v411_v30 }
 0x142   : > { %v441_v33 = vrot.slane %v435_v32, 7 }
 0x144   : > { %442 = vrot.lane.b32.xlu0 %v441_v33, %s777_s12 }
 0x147   : > { %v414_v34 = vpop.f32.mrf.mxu2  ;;  %v437_v35 = vpop.f32.mrf.mxu3 }
 0x148   : > { %v438_v36 = vadd.f32 %v437_v35, %v414_v34 }
 0x1b3   : > { %450 = sbr.rel (%p594_p0) target bundleno = 447 (0x1bf), region = 40 }
 0x1b6   : > { %v443_v37 = vpop.permute.xlu0 %442 }
 0x1b7   : > { %v445_v38 = vadd.f32 %v443_v37, %v435_v32  ;;  %v446_v39 = vadd.f32 %v443_v37, %v438_v36 }
 0x1b8   : > { %v451_v40 = vld [vmem:[%s916_s24] sm:$0xff]  ;;  %vm457_vm11 = vcmask 130049   ;;  %vm459_vm12 = vcmask 122880  }
 0x1b9   : > { %v453_v41 = vrot.slane %v451_v40, 7 }
 0x1bb   : > { %v455_v42 = vmul.f32 %v453_v41, %v445_v38  ;;  %v456_v43 = vmul.f32 %v453_v41, %v446_v39 }
 0x1bd   : > { %458 = vst.msk [vmem:[%s227_s6 - $0x1] sm:$0xfe] %vm457_vm11, %v455_v42 }
 0x1be   : > { %460 = vst.msk [vmem:[%s227_s6 + $0x7] sm:$0x1] %vm459_vm12, %v456_v43 }
 0x1bf PF: > { %p595_p1 = scmp.eq.s32.totalorder %s759_s18, 0 }
 0x1c1   : > { %464 = sbr.rel (%p595_p1) target bundleno = 457 (0x1c9), region = 44 }
 0x1c6   : > { %vm465_vm13 = vcmask 130049   ;;  %vm467_vm14 = vcmask 122880  }
 0x1c7   : > { %466 = vst.msk [vmem:[%s227_s6 - $0x1] sm:$0xfe] %vm465_vm13, %v445_v38 }
 0x1c8   : > { %468 = vst.msk [vmem:[%s227_s6 + $0x7] sm:$0x1] %vm467_vm14, %v446_v39 }
 0x1c9 PF: > { %s597_s23 = sshll.u32 %s759_s18, 1  ;;  %s484_s9 = sshll.u32 %s227_s6, 4  ;;  %s485_s9 = int_to_ptr.vmem [resolvable:$true] %s484_s9 }
 0x1ca   : > { %s480_s24 = sadd.s32 %s763_s19, %s597_s23  ;;  %s1070_s1 = sand.u32 1, %s751_s16  }
 0x1cb   : > { %s598_s8 = sshll.u32 %s480_s24, 3  ;;  %s470_s27 = scalar_lea.sflag [#allocation3], %s1070_s1 }
 0x1cc   : > { %s482_s13 = scalar_lea.hbm %s1064_s4, %s598_s8  ;;  %s701_s12 = scalar_lea.hbm %s1064_s4, 32 }
 0x1cd   : > { %s486_s14 = sshll.u32 %s482_s13, 4  ;;  %s487_s14 = int_to_ptr.hbm [resolvable:$true] %s486_s14 }
 0x1ce   : > { %s695_s30 = sshra.s32 %s487_s14, 4  ;;  %s696_s30 = int_to_ptr.hbm [resolvable:$true] %s695_s30 }
 0x1cf   : > { %s697_s5 = scalar_lea.hbm %s696_s30, 8  ;;  %p702_p6 = scmp.lt.s32.totalorder %s696_s30, %s1064_s4 }
 0x1d0   : > { %p698_p2 = scmp.ne.s32.totalorder %s696_s30, %s697_s5  ;;  %p703_p7 = scmp.lt.s32.totalorder %s701_s12, %s697_s5 }
 0x1d2   : > { %p699_p4 = pnand %p698_p2, %p854_p3  ;;  %p704_p9 = por %p703_p7, %p702_p6 }
 0x1d4   : > { %p700_p5 = pneg %p699_p4 }
 0x1d6   : > { %p705_p10 = pnand %p704_p9, %p700_p5 }
 0x1d8   : > { %708 = shalt.err (!%p705_p10)
}
 0x1d9   : > { %601 = dma.vmem_to_hbm [thread:$0]  (%p854_p3), %s485_s9, 128, %s487_s14, %s470_s27  }
 0x1da PF: > { %p607_p11 = scmp.ge.s32.totalorder %s775_s22, 2  ;;  %s498_s24 = sand.u32 1, %s747_s15  }
 0x1db   : > { %s499_s8 = scalar_lea.sflag [#allocation3], %s498_s24 }
 0x1dc   : > { %p604_p12 = pnand %p607_p11, %p863_p8 }
 0x1de   : > { %p605_p13 = pneg %p604_p12 }
 0x1e0   : > { %742 = dma.done.wait (%p605_p13), %s499_s8, 128  }
 0x1e1   : > { %744 = vsyncadd (%p605_p13), %s499_s8, 4294967168  ;;  %s17_s22 = sadd.s32 1, %s775_s22   ;;  %s1071_s15 = smov %s751_s16 }
 0x1e2   : > { %p14_p0 = scmp.ge.s32.totalorder %s17_s22, 6   ;;  %s1072_s16 = smov %s755_s17 }
 0x1e3   : > { %s1073_s17 = smov %s872_s7  ;;  %s1074_s18 = smov %s767_s20 }
 0x1e4   : > { %s1075_s19 = smov %s771_s21  ;;  %s1076_s20 = smov %s1079_s25 }
 0x1e5   : > { %s1077_s21 = smov %s1083_s26  ;;  %16 = sbr.rel (!%p14_p0) target bundleno = 7 (0x7), region = 82 }
 0x1ea   :  { %505 = vsyncpa [#allocation3], 1 }
 0x1eb   :  { %507 = vsyncpa [#allocation3 + $0x1], 1 }

// kernel: tpu_custom_call.1
= control target key start
LH: loop header
LB: loop body
LE: loop exit
PB: predicated region body
PF: predicated region fallthrough
CT: control target
= control target key end

     0   :  { %s1060_s0 = inlined_call_operand.vmem [shape: f32[2,2,9,32], index: 0, kind: input, shape index: {}]   ;;  %s1061_s1 = inlined_call_operand.vmem [shape: f32[32,256], index: 1, kind: input, shape index: {}]   ;;  %s1062_s2 = inlined_call_operand.vmem [shape: f32[256,32], index: 2, kind: input, shape index: {}]   ;;  %s1063_s3 = inlined_call_operand.vmem [shape: f32[16,16], index: 3, kind: input, shape index: {}]   ;;  %s1064_s4 = inlined_call_operand.hbm [shape: f32[2,16,16], index: 4, kind: output, shape index: {}]  }
   0x1   :  { %1066 = sst [smem:[#allocation5_spill]] %s1061_s1 }
   0x2   :  { %9 = vsyncpa [#allocation3], 0 }
   0x3   :  { %11 = vsyncpa [#allocation3 + $0x1], 0  ;;  %s803_s15 = smov 0   ;;  %s805_s16 = smov 0  }
   0x4   :  { %s807_s17 = smov 0   ;;  %s809_s18 = smov 0  }
   0x5   :  { %s811_s19 = smov 0   ;;  %s813_s20 = smov 0  }
   0x6   :  { %s815_s21 = smov 0   ;;  %s817_s22 = smov 0  }
   0x7 LB: > { %s580_s23 = sadd.s32 4294967295, %s775_s22   ;;  %s581_s24 = sadd.s32 4294967294, %s775_s22   ;;  %s775_s22 = sphi %s817_s22, %s17_s22   ;;  %s771_s21 = sphi %s815_s21, %s1077_s21   ;;  %s767_s20 = sphi %s813_s20, %s1076_s20   ;;  %s763_s19 = sphi %s811_s19, %s1075_s19   ;;  %s759_s18 = sphi %s809_s18, %s1074_s18   ;;  %s755_s17 = sphi %s807_s17, %s1073_s17   ;;  %s751_s16 = sphi %s805_s16, %s1072_s16   ;;  %s747_s15 = sphi %s803_s15, %s1071_s15  }
   0x8   : > { %s26_s25 = sadd.s32 1, %s767_s20  ;;  %s29_s26 = sadd.s32 1, %s771_s21 }
   0x9   : > { %p27_p0 = scmp.ge.s32.totalorder %s26_s25, 2  ;;  %p144_p1 = scmp.ne.s32.totalorder %s755_s17, %s751_s16 }
   0xa   : > { %p145_p2 = scmp.eq.s32.totalorder %s580_s23, 3  ;;  %p150_p5 = scmp.ne.s32.totalorder %s751_s16, %s747_s15 }
   0xb   : > { %s1079_s25 = smov (%p27_p0, %s26_s25), 0  ;;  %s1081_s26 = smov (!%p27_p0, %s29_s26), %s771_s21 }
   0xc   : > { %s129_s27 = ssub.s32 %s767_s20, %s1079_s25  ;;  %p854_p3 = por %p145_p2, %p144_p1 }
   0xd   : > { %p31_p4 = scmp.ge.s32.totalorder %s1081_s26, 2  ;;  %p151_p6 = scmp.eq.s32.totalorder %s581_s24, 3 }
   0xe   : > { %p584_p7 = scmp.ge.s32.totalorder %s775_s22, 1  ;;  %p194_p9 = scmp.lt.s32.totalorder %s775_s22, 5 }
   0xf   : > { %s1083_s26 = smov (%p31_p4, %s1081_s26), 0  ;;  %p863_p8 = por %p151_p6, %p150_p5 }
  0x10   : > { %s130_s30 = ssub.s32 %s771_s21, %s1083_s26  ;;  %s134_s5 = sadd.s32 1, %s755_s17 }
  0x11   : > { %s131_s6 = sor.u32 %s130_s30, %s129_s27  ;;  %p195_p10 = pnand %p584_p7, %p194_p9 }
  0x12   : > { %p132_p11 = scmp.eq.s32.totalorder %s131_s6, 0  ;;  %s1065_s8 = sand.u32 (!%p195_p10), 1, %s751_s16  }
  0x13   : > { %198 = sbr.rel (%p195_p10) target bundleno = 474 (0x1da), region = 36  ;;  %s1069_s1 = sld [smem:[#allocation5_spill]] (!%p195_p10) }
  0x14   : > { %s872_s7 = scalar_select %p132_p11, %s755_s17, %s134_s5  }
  0x15   : > { %p228_p12 = scmp.lt.s32.totalorder (!%p195_p10), %s759_s18, 1  ;;  %s887_s23 = sshll.u32 (!%p195_p10), %s1065_s8, 3 }
  0x16   : > { %p230_p13 = scmp.lt.s32.totalorder (!%p195_p10), %s763_s19, 1  ;;  %p594_p0 = scmp.ne.s32.totalorder (!%p195_p10), %s759_s18, 0 }
  0x18   : > { %v377_v6 = vld [vmem:[%s1062_s2 + $0x78] sm:$0xff]  ;;  %s229_s12 = scalar_select %p228_p12, %s759_s18, 1  ;;  %vm251_vm0 = vcmask 261120   ;;  %v376_v12 = vld [vmem:[%s1062_s2 + $0x70] sm:$0xff]  ;;  %v375_v14 = vld [vmem:[%s1062_s2 + $0x68] sm:$0xff] }
  0x19   : > { %v249_v0 = vld [vmem:[%s1069_s1 + $0x30] sm:$0xff]  ;;  %v250_v1 = vld [vmem:[%s1069_s1 + $0x38] sm:$0xff]  ;;  %v247_v2 = vld [vmem:[%s1069_s1 + $0x20] sm:$0xff]  ;;  %s231_s6 = scalar_select %p230_p13, %s763_s19, 1  ;;  %394 = vmatpush.msra.mxu2 %v377_v6 }
  0x1a   : > { %270 = vmatpush.msra.mxu0 %v249_v0  ;;  %293 = vmatpush.msra.mxu1 %v250_v1  ;;  %v248_v3 = vld [vmem:[%s1069_s1 + $0x28] sm:$0xff]  ;;  %v245_v4 = vld [vmem:[%s1069_s1 + $0x10] sm:$0xff]  ;;  %v246_v5 = vld [vmem:[%s1069_s1 + $0x18] sm:$0xff]  ;;  %s587_s9 = sshll.u32 %s229_s12, 2  ;;  %s777_s12 = smov 112  }
  0x1b   : > { %v393_v7 = vld [vmem:[%s1062_s2 + $0xf8] sm:$0xff]  ;;  %v243_v8 = vld [vmem:[%s1069_s1] sm:$0xff]  ;;  %v244_v9 = vld [vmem:[%s1069_s1 + $0x8] sm:$0xff]  ;;  %s586_s10 = sshll.u32 %s231_s6, 1  ;;  %s589_s11 = sshll.u32 %s231_s6, 3  ;;  %395 = vmatpush.msra.mxu2 %v376_v12 }
  0x1c   : > { %271 = vmatpush.msra.mxu0 %v247_v2  ;;  %294 = vmatpush.msra.mxu1 %v248_v3  ;;  %s234_s13 = sadd.s32 %s587_s9, %s586_s10  ;;  %s916_s24 = scalar_lea.vmem %s1063_s3, %s589_s11  ;;  %v392_v13 = vld [vmem:[%s1062_s2 + $0xf0] sm:$0xff]  ;;  %v391_v15 = vld [vmem:[%s1062_s2 + $0xe8] sm:$0xff]  ;;  %v374_v16 = vld [vmem:[%s1062_s2 + $0x60] sm:$0xff] }
  0x1d   : > { %417 = vmatpush.msra.mxu3 %v393_v7  ;;  %s588_s27 = sshll.u32 %s234_s13, 3  ;;  %396 = vmatpush.msra.mxu2 %v375_v14  ;;  %v390_v17 = vld [vmem:[%s1062_s2 + $0xe0] sm:$0xff]  ;;  %v373_v18 = vld [vmem:[%s1062_s2 + $0x58] sm:$0xff]  ;;  %v372_v20 = vld [vmem:[%s1062_s2 + $0x50] sm:$0xff]  ;;  %s227_s6 = scalar_lea.vmem [#allocation2], %s887_s23 }
  0x1e   : > { %272 = vmatpush.msra.mxu0 %v245_v4  ;;  %295 = vmatpush.msra.mxu1 %v246_v5  ;;  %s236_s1 = scalar_lea.vmem %s1060_s0, %s588_s27  ;;  %v389_v19 = vld [vmem:[%s1062_s2 + $0xd8] sm:$0xff]  ;;  %v388_v21 = vld [vmem:[%s1062_s2 + $0xd0] sm:$0xff]  ;;  %v371_v22 = vld [vmem:[%s1062_s2 + $0x48] sm:$0xff] }
  0x1f   : > { %v241_v10 = vld [vmem:[%s236_s1] sm:$0xff]  ;;  %v242_v11 = vld [vmem:[%s236_s1 + $0x8] sm:$0x1]  ;;  %418 = vmatpush.msra.mxu3 %v392_v13  ;;  %397 = vmatpush.msra.mxu2 %v374_v16  ;;  %v369_v26 = vld [vmem:[%s1062_s2 + $0x38] sm:$0xff] }
  0x20   : > { %273 = vmatpush.msra.mxu0 %v243_v8  ;;  %296 = vmatpush.msra.mxu1 %v244_v9  ;;  %v387_v23 = vld [vmem:[%s1062_s2 + $0xc8] sm:$0xff]  ;;  %v370_v24 = vld [vmem:[%s1062_s2 + $0x40] sm:$0xff]  ;;  %v385_v27 = vld [vmem:[%s1062_s2 + $0xb8] sm:$0xff] }
  0x21   : > { %590 = vmatmul.msk.f32.vlgmr.msra.gmra.mxu0 %vm251_vm0, %v241_v10  ;;  %592 = vmatmul.msk.f32.vlgmr.msra.gmra.mxu1 %vm251_vm0, %v241_v10  ;;  %v386_v25 = vld [vmem:[%s1062_s2 + $0xc0] sm:$0xff]  ;;  %v368_v28 = vld [vmem:[%s1062_s2 + $0x30] sm:$0xff]  ;;  %v367_v30 = vld [vmem:[%s1062_s2 + $0x28] sm:$0xff] }
  0x22   : > { %419 = vmatpush.msra.mxu3 %v391_v15  ;;  %398 = vmatpush.msra.mxu2 %v373_v18  ;;  %v384_v29 = vld [vmem:[%s1062_s2 + $0xb0] sm:$0xff]  ;;  %v383_v31 = vld [vmem:[%s1062_s2 + $0xa8] sm:$0xff]  ;;  %v366_v32 = vld [vmem:[%s1062_s2 + $0x20] sm:$0xff] }
  0x23   : > { %v382_v33 = vld [vmem:[%s1062_s2 + $0xa0] sm:$0xff]  ;;  %v365_v34 = vld [vmem:[%s1062_s2 + $0x18] sm:$0xff]  ;;  %v364_v36 = vld [vmem:[%s1062_s2 + $0x10] sm:$0xff] }
  0x24   : > { %420 = vmatpush.msra.mxu3 %v390_v17  ;;  %399 = vmatpush.msra.mxu2 %v372_v20  ;;  %v381_v35 = vld [vmem:[%s1062_s2 + $0x98] sm:$0xff]  ;;  %v380_v37 = vld [vmem:[%s1062_s2 + $0x90] sm:$0xff]  ;;  %v363_v38 = vld [vmem:[%s1062_s2 + $0x8] sm:$0xff] }
  0x25   : > { %v379_v39 = vld [vmem:[%s1062_s2 + $0x88] sm:$0xff]  ;;  %v362_v40 = vld [vmem:[%s1062_s2] sm:$0xff] }
  0x26   : > { %421 = vmatpush.msra.mxu3 %v389_v19  ;;  %400 = vmatpush.msra.mxu2 %v371_v22  ;;  %v378_v41 = vld [vmem:[%s1062_s2 + $0x80] sm:$0xff] }
  0x28   : > { %422 = vmatpush.msra.mxu3 %v388_v21  ;;  %401 = vmatpush.msra.mxu2 %v370_v24 }
  0x29   : > { %591 = vmatmul.msk.f32.gmra.mxu0 %vm251_vm0, %v242_v11  ;;  %593 = vmatmul.msk.f32.gmra.mxu1 %vm251_vm0, %v242_v11 }
  0x2a   : > { %423 = vmatpush.msra.mxu3 %v387_v23  ;;  %402 = vmatpush.msra.mxu2 %v369_v26 }
  0x2c   : > { %424 = vmatpush.msra.mxu3 %v386_v25  ;;  %403 = vmatpush.msra.mxu2 %v368_v28 }
  0x2e   : > { %425 = vmatpush.msra.mxu3 %v385_v27  ;;  %404 = vmatpush.msra.mxu2 %v367_v30 }
  0x30   : > { %426 = vmatpush.msra.mxu3 %v384_v29  ;;  %405 = vmatpush.msra.mxu2 %v366_v32 }
  0x32   : > { %427 = vmatpush.msra.mxu3 %v383_v31  ;;  %406 = vmatpush.msra.mxu2 %v365_v34 }
  0x34   : > { %428 = vmatpush.msra.mxu3 %v382_v33  ;;  %407 = vmatpush.msra.mxu2 %v364_v36 }
  0x36   : > { %429 = vmatpush.msra.mxu3 %v381_v35  ;;  %408 = vmatpush.msra.mxu2 %v363_v38 }
  0x38   : > { %430 = vmatpush.msra.mxu3 %v380_v37  ;;  %409 = vmatpush.msra.mxu2 %v362_v40 }
  0x3a   : > { %431 = vmatpush.msra.mxu3 %v379_v39 }
  0x3c   : > { %432 = vmatpush.msra.mxu3 %v378_v41 }
  0x9e   : > { %v275_v42 = vpop.f32.mrf.mxu0  ;;  %v298_v43 = vpop.f32.mrf.mxu1 }
  0x9f   : > { %v304_v44 = vmul.f32 %v275_v42, %v275_v42  ;;  %v306_v45 = vmul.f32 %v298_v43, %v298_v43 }
  0xa1   : > { %v308_v46 = vadd.f32 %v306_v45, %v304_v44 }
  0xa3   : > { %673 = vrsqrt.f32 %v308_v46  ;;  %v334_v47 = vmax.f32 %v308_v46, 1e-30  ;;  %vm317_vm2 = vcmp.eq.f32.partialorder %v308_v46, inf  ;;  %v320_v6 = vand.u32 2147483648, %v308_v46 }
  0xa4   : > { %vm319_vm4 = vcmp.eq.f32.partialorder %v308_v46, 0.0 }
  0xa5   : > { %675 = vrsqrt.f32 %v334_v47  ;;  %vm342_vm3 = vweird.f32 %v334_v47 }
  0xa6   : > { %v278_v48 = vpop.f32.mrf.mxu0  ;;  %v301_v49 = vpop.f32.mrf.mxu1 }
  0xa7   : > { %v305_v50 = vmul.f32 %v278_v48, %v278_v48  ;;  %v307_v51 = vmul.f32 %v301_v49, %v301_v49 }
  0xa9   : > { %v674_v52 = vpop.eup %673  ;;  %v309_v53 = vadd.f32 %v307_v51, %v305_v50 }
  0xaa   : > { %v311_v54 = vmul.f32 %v674_v52, %v308_v46 }
  0xab   : > { %677 = vrsqrt.f32 %v309_v53  ;;  %v676_v55 = vpop.eup %675  ;;  %v335_v57 = vmax.f32 %v309_v53, 1e-30  ;;  %vm329_vm8 = vcmp.eq.f32.partialorder %v309_v53, inf  ;;  %v332_v20 = vand.u32 2147483648, %v309_v53 }
  0xac   : > { %v312_v56 = vmul.f32 %v674_v52, %v311_v54  ;;  %v337_v58 = vmul.f32 %v676_v55, %v334_v47  ;;  %vm343_vm1 = vweird.f32 %v676_v55  ;;  %vm331_vm9 = vcmp.eq.f32.partialorder %v309_v53, 0.0 }
  0xad   : > { %679 = vrsqrt.f32 %v335_v57  ;;  %vm344_vm5 = vmor %vm342_vm3, %vm343_vm1  ;;  %vm352_vm6 = vweird.f32 %v335_v57 }
  0xae   : > { %v313_v59 = vmul.f32 0.5, %v312_v56  ;;  %v338_v60 = vmul.f32 %v676_v55, %v337_v58 }
  0xb0   : > { %v314_v61 = vsub.f32 1.5, %v313_v59  ;;  %v339_v63 = vmul.f32 0.5, %v338_v60 }
  0xb1   : > { %v678_v62 = vpop.eup %677 }
  0xb2   : > { %v315_v0 = vmul.f32 %v674_v52, %v314_v61  ;;  %v323_v1 = vmul.f32 %v678_v62, %v309_v53  ;;  %v340_v2 = vsub.f32 1.5, %v339_v63 }
  0xb3   : > { %v680_v3 = vpop.eup %679 }
  0xb4   : > { %v316_v4 = vmul.f32 %v315_v0, %v308_v46  ;;  %v324_v5 = vmul.f32 %v678_v62, %v323_v1  ;;  %v341_v7 = vmul.f32 %v676_v55, %v340_v2  ;;  %v347_v8 = vmul.f32 %v680_v3, %v335_v57 }
  0xb5   : > { %vm353_vm7 = vweird.f32 %v680_v3 }
  0xb6   : > { %v318_v9 = vsel %vm317_vm2, %v308_v46, %v316_v4  ;;  %v325_v10 = vmul.f32 0.5, %v324_v5  ;;  %v345_v12 = vsel %vm344_vm5, %v676_v55, %v341_v7  ;;  %v348_v13 = vmul.f32 %v680_v3, %v347_v8  ;;  %vm354_vm10 = vmor %vm352_vm6, %vm353_vm7 }
  0xb7   : > { %v321_v11 = vsel %vm319_vm4, %v320_v6, %v318_v9 }
  0xb8   : > { %v356_v14 = vmul.f32 %v345_v12, %v321_v11  ;;  %v326_v15 = vsub.f32 1.5, %v325_v10  ;;  %v349_v16 = vmul.f32 0.5, %v348_v13 }
  0xba   : > { %v358_v17 = vmul.f32 %v356_v14, %v275_v42  ;;  %v360_v18 = vmul.f32 %v356_v14, %v298_v43  ;;  %v327_v19 = vmul.f32 %v678_v62, %v326_v15  ;;  %v350_v21 = vsub.f32 1.5, %v349_v16 }
  0xbc   : > { %410 = vmatmul.f32.vlgmr.msra.gmra.mxu2 %v358_v17  ;;  %433 = vmatmul.f32.vlgmr.msra.gmra.mxu3 %v360_v18  ;;  %v328_v22 = vmul.f32 %v327_v19, %v309_v53  ;;  %v351_v23 = vmul.f32 %v680_v3, %v350_v21 }
  0xbe   : > { %v330_v24 = vsel %vm329_vm8, %v309_v53, %v328_v22  ;;  %v355_v26 = vsel %vm354_vm10, %v680_v3, %v351_v23 }
  0xbf   : > { %v333_v25 = vsel %vm331_vm9, %v332_v20, %v330_v24 }
  0xc0   : > { %v357_v27 = vmul.f32 %v355_v26, %v333_v25 }
  0xc2   : > { %v361_v28 = vmul.f32 %v357_v27, %v301_v49  ;;  %v359_v29 = vmul.f32 %v357_v27, %v278_v48 }
  0xc4   : > { %413 = vmatmul.f32.gmra.mxu2 %v359_v29  ;;  %436 = vmatmul.f32.gmra.mxu3 %v361_v28 }
 0x13f   : > { %v411_v30 = vpop.f32.mrf.mxu2  ;;  %v434_v31 = vpop.f32.mrf.mxu3 }
 0x140   : > { %v435_v32 = vadd.f32 %v434_v31, %v411_v30 }
 0x142   : > { %v441_v33 = vrot.slane %v435_v32, 7 }
 0x144   : > { %442 = vrot.lane.b32.xlu0 %v441_v33, %s777_s12 }
 0x147   : > { %v414_v34 = vpop.f32.mrf.mxu2  ;;  %v437_v35 = vpop.f32.mrf.mxu3 }
 0x148   : > { %v438_v36 = vadd.f32 %v437_v35, %v414_v34 }
 0x1b3   : > { %450 = sbr.rel (%p594_p0) target bundleno = 447 (0x1bf), region = 40 }
 0x1b6   : > { %v443_v37 = vpop.permute.xlu0 %442 }
 0x1b7   : > { %v445_v38 = vadd.f32 %v443_v37, %v435_v32  ;;  %v446_v39 = vadd.f32 %v443_v37, %v438_v36 }
 0x1b8   : > { %v451_v40 = vld [vmem:[%s916_s24] sm:$0xff]  ;;  %vm457_vm11 = vcmask 130049   ;;  %vm459_vm12 = vcmask 122880  }
 0x1b9   : > { %v453_v41 = vrot.slane %v451_v40, 7 }
 0x1bb   : > { %v455_v42 = vmul.f32 %v453_v41, %v445_v38  ;;  %v456_v43 = vmul.f32 %v453_v41, %v446_v39 }
 0x1bd   : > { %458 = vst.msk [vmem:[%s227_s6 - $0x1] sm:$0xfe] %vm457_vm11, %v455_v42 }
 0x1be   : > { %460 = vst.msk [vmem:[%s227_s6 + $0x7] sm:$0x1] %vm459_vm12, %v456_v43 }
 0x1bf PF: > { %p595_p1 = scmp.eq.s32.totalorder %s759_s18, 0 }
 0x1c1   : > { %464 = sbr.rel (%p595_p1) target bundleno = 457 (0x1c9), region = 44 }
 0x1c6   : > { %vm465_vm13 = vcmask 130049   ;;  %vm467_vm14 = vcmask 122880  }
 0x1c7   : > { %466 = vst.msk [vmem:[%s227_s6 - $0x1] sm:$0xfe] %vm465_vm13, %v445_v38 }
 0x1c8   : > { %468 = vst.msk [vmem:[%s227_s6 + $0x7] sm:$0x1] %vm467_vm14, %v446_v39 }
 0x1c9 PF: > { %s597_s23 = sshll.u32 %s759_s18, 1  ;;  %s484_s9 = sshll.u32 %s227_s6, 4  ;;  %s485_s9 = int_to_ptr.vmem [resolvable:$true] %s484_s9 }
 0x1ca   : > { %s480_s24 = sadd.s32 %s763_s19, %s597_s23  ;;  %s1070_s1 = sand.u32 1, %s751_s16  }
 0x1cb   : > { %s598_s8 = sshll.u32 %s480_s24, 3  ;;  %s470_s27 = scalar_lea.sflag [#allocation3], %s1070_s1 }
 0x1cc   : > { %s482_s13 = scalar_lea.hbm %s1064_s4, %s598_s8  ;;  %s701_s12 = scalar_lea.hbm %s1064_s4, 32 }
 0x1cd   : > { %s486_s14 = sshll.u32 %s482_s13, 4  ;;  %s487_s14 = int_to_ptr.hbm [resolvable:$true] %s486_s14 }
 0x1ce   : > { %s695_s30 = sshra.s32 %s487_s14, 4  ;;  %s696_s30 = int_to_ptr.hbm [resolvable:$true] %s695_s30 }
 0x1cf   : > { %s697_s5 = scalar_lea.hbm %s696_s30, 8  ;;  %p702_p6 = scmp.lt.s32.totalorder %s696_s30, %s1064_s4 }
 0x1d0   : > { %p698_p2 = scmp.ne.s32.totalorder %s696_s30, %s697_s5  ;;  %p703_p7 = scmp.lt.s32.totalorder %s701_s12, %s697_s5 }
 0x1d2   : > { %p699_p4 = pnand %p698_p2, %p854_p3  ;;  %p704_p9 = por %p703_p7, %p702_p6 }
 0x1d4   : > { %p700_p5 = pneg %p699_p4 }
 0x1d6   : > { %p705_p10 = pnand %p704_p9, %p700_p5 }
 0x1d8   : > { %708 = shalt.err (!%p705_p10)
}
 0x1d9   : > { %601 = dma.vmem_to_hbm [thread:$0]  (%p854_p3), %s485_s9, 128, %s487_s14, %s470_s27  }
 0x1da PF: > { %p607_p11 = scmp.ge.s32.totalorder %s775_s22, 2  ;;  %s498_s24 = sand.u32 1, %s747_s15  }
 0x1db   : > { %s499_s8 = scalar_lea.sflag [#allocation3], %s498_s24 }
 0x1dc   : > { %p604_p12 = pnand %p607_p11, %p863_p8 }
 0x1de   : > { %p605_p13 = pneg %p604_p12 }
 0x1e0   : > { %742 = dma.done.wait (%p605_p13), %s499_s8, 128  }
 0x1e1   : > { %744 = vsyncadd (%p605_p13), %s499_s8, 4294967168  ;;  %s17_s22 = sadd.s32 1, %s775_s22   ;;  %s1071_s15 = smov %s751_s16 }
 0x1e2   : > { %p14_p0 = scmp.ge.s32.totalorder %s17_s22, 6   ;;  %s1072_s16 = smov %s755_s17 }
 0x1e3   : > { %s1073_s17 = smov %s872_s7  ;;  %s1074_s18 = smov %s767_s20 }
 0x1e4   : > { %s1075_s19 = smov %s771_s21  ;;  %s1076_s20 = smov %s1079_s25 }
 0x1e5   : > { %s1077_s21 = smov %s1083_s26  ;;  %16 = sbr.rel (!%p14_p0) target bundleno = 7 (0x7), region = 82 }
 0x1ea   :  { %505 = vsyncpa [#allocation3], 1 }
 0x1eb   :  { %507 = vsyncpa [#allocation3 + $0x1], 1 }

</bundles_post_ra>
